<compile_context>
chip_gen: v7x
topology: tpu7x:2x2x1
jax: 0.10.0
libtpu: 0.0.40
codegen_flags: <defaults>
</compile_context>

<pallas_src>
import functools

import jax
import jax.numpy as jnp
from jax.experimental import pallas as pl
from jax.experimental.pallas import tpu as pltpu


def _round_up(x: int, m: int) -> int:
    return ((x + m - 1) // m) * m


def _apply_activation(acc, activation):
    if activation is None:
        return acc
    if activation == "Tanh":
        return jnp.tanh(acc)
    if activation == "ReLU":
        return jnp.maximum(acc, 0.0)
    if activation == "Sigmoid":
        return jax.nn.sigmoid(acc)
    if activation == "GELU":
        # torch.nn.GELU default is the exact erf form.
        return jax.nn.gelu(acc, approximate=False)
    raise ValueError(f"unsupported activation: {activation}")


def _linear_kernel(x_ref, w_ref, b_ref, o_ref, acc_ref, *, activation):
    # x_ref  : (tm, tk)  input tile
    # w_ref  : (tk, tn)  weight tile, already transposed to (K, N) layout
    # b_ref  : (1,  tn)  bias tile
    # o_ref  : (tm, tn)  output tile
    # acc_ref: (tm, tn)  f32 accumulator (VMEM scratch, persists across k)
    k = pl.program_id(2)

    @pl.when(k == 0)
    def _():
        acc_ref[...] = jnp.zeros_like(acc_ref)

    # K-major RHS: feeds the MXU weight path directly, f32 accumulation.
    acc_ref[...] += jnp.dot(
        x_ref[...], w_ref[...], preferred_element_type=jnp.float32
    )

    @pl.when(k == pl.num_programs(2) - 1)
    def _():
        acc = acc_ref[...] + b_ref[...].astype(jnp.float32)
        acc = _apply_activation(acc, activation)   # f32 epilogue on VPU/EUP
        o_ref[...] = acc.astype(o_ref.dtype)


def _select_tiles(m, n_rounded, k_rounded, compute_dtype, tm, tn, tk):
    """Pick lane-dense, sublane-aligned tiles that fill VMEM sensibly."""
    sublane = 16 if jnp.dtype(compute_dtype).itemsize < 4 else 8
    m_rounded = _round_up(max(m, 1), sublane)

    if tm is None:
        # Small M (GEMV-like): one M tile so the weight is streamed exactly once.
        tm = m_rounded if m_rounded <= 512 else 512
    if tn is None:
        tn = n_rounded if n_rounded <= 512 else 512
    if tk is None:
        tk = k_rounded if k_rounded <= 2048 else 2048
    return tm, tn, tk


def linear_forward(x, weight, bias, activation=None, *,
                   compute_dtype=None, tm=None, tn=None, tk=None):
    """Pallas equivalent of segnlp Linear.forward.

    x      : (..., input_size)
    weight : (hidden_size, input_size)   (torch nn.Linear layout)
    bias   : (hidden_size,)
    compute_dtype : optional dtype (e.g. jnp.bfloat16) for the MXU operands;
                    accumulation and epilogue stay f32, output keeps x.dtype.
    """
    in_size = x.shape[-1]
    hidden = weight.shape[0]
    assert weight.shape == (hidden, in_size)
    assert bias.shape == (hidden,)

    out_dtype = x.dtype
    cdt = jnp.dtype(compute_dtype) if compute_dtype is not None else jnp.dtype(x.dtype)

    lead = x.shape[:-1]
    m = 1
    for d in lead:
        m *= d
    x2d = x.reshape(m, in_size)

    n_rounded = _round_up(hidden, 128)
    k_rounded = _round_up(in_size, 128)
    tm, tn, tk = _select_tiles(m, n_rounded, k_rounded, cdt, tm, tn, tk)

    m_p = _round_up(m, tm)
    n_p = _round_up(hidden, tn)
    k_p = _round_up(in_size, tk)

    # ---- operand prep: cast (optional) + transpose weight once + pad ragged dims
    # TODO(synk): in a real serving path, hoist the weight transpose/pad/cast out
    # of the per-call hot path (it is a pure function of the parameters).
    if cdt != x2d.dtype:
        x2d = x2d.astype(cdt)
    w_t = weight.T                                    # (K, N), single transpose
    if cdt != w_t.dtype:
        w_t = w_t.astype(cdt)

    if (m_p, k_p) != (m, in_size):
        x2d = jnp.pad(x2d, ((0, m_p - m), (0, k_p - in_size)))
    if (k_p, n_p) != (in_size, hidden):
        w_t = jnp.pad(w_t, ((0, k_p - in_size), (0, n_p - hidden)))
    b2d = bias.reshape(1, hidden)
    if n_p != hidden:
        b2d = jnp.pad(b2d, ((0, 0), (0, n_p - hidden)))

    grid = (m_p // tm, n_p // tn, k_p // tk)
    kernel = functools.partial(_linear_kernel, activation=activation)

    # VMEM footprint: double-buffered x/W tiles + double-buffered output + acc.
    in_elt = jnp.dtype(cdt).itemsize
    out_elt = jnp.dtype(out_dtype).itemsize
    est = (2 * (tm * tk + tk * tn) * in_elt
           + 2 * tm * tn * out_elt
           + tm * tn * 4
           + 2 * tn * in_elt)
    vmem_limit = min(max(int(est * 3 // 2), 32 * 1024 * 1024), 48 * 1024 * 1024)

    out = pl.pallas_call(
        kernel,
        out_shape=jax.ShapeDtypeStruct((m_p, n_p), out_dtype),
        grid_spec=pltpu.PrefetchScalarGridSpec(
            num_scalar_prefetch=0,
            grid=grid,
            in_specs=[
                pl.BlockSpec((tm, tk), lambda i, j, k: (i, k)),   # x tile
                pl.BlockSpec((tk, tn), lambda i, j, k: (k, j)),   # W^T tile (K,N)
                pl.BlockSpec((1, tn), lambda i, j, k: (0, j)),    # bias tile
            ],
            out_specs=pl.BlockSpec((tm, tn), lambda i, j, k: (i, j)),
            scratch_shapes=[pltpu.VMEM((tm, tn), jnp.float32)],
        ),
        compiler_params=pltpu.CompilerParams(
            dimension_semantics=("parallel", "parallel", "arbitrary"),
            vmem_limit_bytes=vmem_limit,
        ),
    )(x2d, w_t, b2d)

    out = out[:m, :hidden]
    return out.reshape(*lead, hidden)


def init_linear_params(key, input_size, hidden_size, dtype=jnp.float32):
    """Deterministic synthetic init matching nn.Linear parameter shapes."""
    kw, kb = jax.random.split(key)
    bound = 1.0 / jnp.sqrt(jnp.asarray(input_size, dtype=jnp.float32))
    weight = jax.random.uniform(
        kw, (hidden_size, input_size), dtype=dtype, minval=-bound, maxval=bound
    )
    bias = jax.random.uniform(
        kb, (hidden_size,), dtype=dtype, minval=-bound, maxval=bound
    )
    return weight, bias


if __name__ == "__main__":
    key = jax.random.PRNGKey(0)
    k_x, k_p = jax.random.split(key)

    # --- small shape matching the module's typical (batch, seq, feat) usage ---
    batch, seq, input_size, hidden_size = 2, 8, 32, 32
    activation = "Tanh"  # None / "ReLU" / "Sigmoid" / "GELU" also supported

    x = jax.random.normal(k_x, (batch, seq, input_size), dtype=jnp.float32)
    weight, bias = init_linear_params(k_p, input_size, hidden_size)

    y = linear_forward(x, weight, bias, activation=activation)
    jax.block_until_ready(y)

    ref = jnp.tanh(x @ weight.T + bias)
    assert y.shape == (batch, seq, hidden_size)
    assert jnp.allclose(y, ref, atol=1e-5, rtol=1e-5)

    # --- larger, ragged shape; force small tiles so the multi-tile (i,j,k)
    #     grid and the K-step accumulator path are actually exercised ---
    k_x2, k_p2 = jax.random.split(k_x)
    x2 = jax.random.normal(k_x2, (4, 96, 384), dtype=jnp.float32)
    w2, b2 = init_linear_params(k_p2, 384, 320)
    y2 = linear_forward(x2, w2, b2, activation="GELU", tm=64, tn=128, tk=128)
    jax.block_until_ready(y2)
    ref2 = jax.nn.gelu(x2 @ w2.T + b2, approximate=False)
    assert y2.shape == (4, 96, 320)
    assert jnp.allclose(y2, ref2, atol=2e-5, rtol=2e-5)

    # --- bf16 compute path (operands cast, f32 accumulation/epilogue) ---
    y3 = linear_forward(x2, w2, b2, activation=None, compute_dtype=jnp.bfloat16)
    jax.block_until_ready(y3)
    ref3 = x2 @ w2.T + b2
    assert y3.dtype == x2.dtype
    assert jnp.allclose(y3, ref3, atol=1e-1, rtol=5e-2)

    print("KERNEL_OK")
</pallas_src>

<mosaic_0001>
module attributes {stable_mosaic.version = 11 : i64} {
  func.func @_linear_kernel(%arg0: i32, %arg1: i32, %arg2: i32, %arg3: memref<16x128xf32, #tpu.memory_space<vmem>>, %arg4: memref<128x128xf32, #tpu.memory_space<vmem>>, %arg5: memref<1x128xf32, #tpu.memory_space<vmem>>, %arg6: memref<16x128xf32, #tpu.memory_space<vmem>>, %arg7: memref<16x128xf32, #tpu.memory_space<vmem>>) attributes {dimension_semantics = [#tpu.dimension_semantics<parallel>, #tpu.dimension_semantics<parallel>, #tpu.dimension_semantics<arbitrary>], iteration_bounds = array<i64: 1, 1, 1>, scalar_prefetch = 0 : i64, scratch_operands = 1 : i64, tpu.core_type = #tpu.core_type<tc>, window_params = [{transform_indices = @transform_0, window_bounds = array<i64: 16, 128>}, {transform_indices = @transform_1, window_bounds = array<i64: 128, 128>}, {transform_indices = @transform_2, window_bounds = array<i64: 1, 128>}, {transform_indices = @transform_3, window_bounds = array<i64: 16, 128>}]} {
    %c0_i32 = arith.constant 0 : i32
    %0 = arith.cmpi eq, %arg2, %c0_i32 : i32
    %1 = arith.extui %0 : i1 to i32
    %c0_i32_0 = arith.constant 0 : i32
    %2 = arith.cmpi ne, %1, %c0_i32_0 : i32
    scf.if %2 {
      %cst_10 = arith.constant 0.000000e+00 : f32
      %12 = vector.broadcast %cst_10 : f32 to vector<16x128xf32>
      %c0_11 = arith.constant 0 : index
      %c0_12 = arith.constant 0 : index
      %13 = vector.load %arg7[%c0_11, %c0_12] : memref<16x128xf32, #tpu.memory_space<vmem>>, vector<16x128xf32>
      tpu.vector_store %arg7[%c0_11, %c0_12], %12 {strides = array<i32>} : memref<16x128xf32, #tpu.memory_space<vmem>>, vector<16x128xf32>,
    } else {
    }
    %c0 = arith.constant 0 : index
    %c0_1 = arith.constant 0 : index
    %3 = vector.load %arg7[%c0, %c0_1] : memref<16x128xf32, #tpu.memory_space<vmem>>, vector<16x128xf32>
    %c0_2 = arith.constant 0 : index
    %c0_3 = arith.constant 0 : index
    %4 = vector.load %arg3[%c0_2, %c0_3] : memref<16x128xf32, #tpu.memory_space<vmem>>, vector<16x128xf32>
    %c0_4 = arith.constant 0 : index
    %c0_5 = arith.constant 0 : index
    %5 = vector.load %arg4[%c0_4, %c0_5] : memref<128x128xf32, #tpu.memory_space<vmem>>, vector<128x128xf32>
    %cst = arith.constant dense<0.000000e+00> : vector<16x128xf32>
    %6 = tpu.matmul %4, %5, %cst {dimension_numbers = #tpu.dot_dimension_numbers<[1], [0], [0], [1], [0, 0, 1, 1], [], []>} : vector<16x128xf32>, vector<128x128xf32>, vector<16x128xf32> -> vector<16x128xf32>
    %7 = arith.addf %3, %6 : vector<16x128xf32>
    %c0_6 = arith.constant 0 : index
    %c0_7 = arith.constant 0 : index
    %8 = vector.load %arg7[%c0_6, %c0_7] : memref<16x128xf32, #tpu.memory_space<vmem>>, vector<16x128xf32>
    tpu.vector_store %arg7[%c0_6, %c0_7], %7 {strides = array<i32>} : memref<16x128xf32, #tpu.memory_space<vmem>>, vector<16x128xf32>,
    %c0_i32_8 = arith.constant 0 : i32
    %9 = arith.cmpi eq, %arg2, %c0_i32_8 : i32
    %10 = arith.extui %9 : i1 to i32
    %c0_i32_9 = arith.constant 0 : i32
    %11 = arith.cmpi ne, %10, %c0_i32_9 : i32
    scf.if %11 {
      %c0_10 = arith.constant 0 : index
      %c0_11 = arith.constant 0 : index
      %12 = vector.load %arg7[%c0_10, %c0_11] : memref<16x128xf32, #tpu.memory_space<vmem>>, vector<16x128xf32>
      %c0_12 = arith.constant 0 : index
      %c0_13 = arith.constant 0 : index
      %13 = vector.load %arg5[%c0_12, %c0_13] : memref<1x128xf32, #tpu.memory_space<vmem>>, vector<1x128xf32>
      %14 = vector.broadcast %13 : vector<1x128xf32> to vector<16x128xf32>
      %15 = arith.addf %12, %14 : vector<16x128xf32>
      %16 = math.tanh %15 : vector<16x128xf32>
      %c0_14 = arith.constant 0 : index
      %c0_15 = arith.constant 0 : index
      %17 = vector.load %arg6[%c0_14, %c0_15] : memref<16x128xf32, #tpu.memory_space<vmem>>, vector<16x128xf32>
      tpu.vector_store %arg6[%c0_14, %c0_15], %16 {strides = array<i32>} : memref<16x128xf32, #tpu.memory_space<vmem>>, vector<16x128xf32>,
    } else {
    }
    return
  }
  func.func @transform_0(%arg0: i32, %arg1: i32, %arg2: i32) -> (i32, i32) {
    %c0_i32 = arith.constant 0 : i32
    return %arg0, %arg2 : i32, i32
  }
  func.func @transform_1(%arg0: i32, %arg1: i32, %arg2: i32) -> (i32, i32) {
    %c0_i32 = arith.constant 0 : i32
    return %arg2, %arg1 : i32, i32
  }
  func.func @transform_2(%arg0: i32, %arg1: i32, %arg2: i32) -> (i32, i32) {
    %c0_i32 = arith.constant 0 : i32
    %c0_i32_0 = arith.constant 0 : i32
    return %c0_i32, %arg1 : i32, i32
  }
  func.func @transform_3(%arg0: i32, %arg1: i32, %arg2: i32) -> (i32, i32) {
    %c0_i32 = arith.constant 0 : i32
    return %arg0, %arg1 : i32, i32
  }
}

</mosaic_0001>

<bundles_post_ra>
// kernel: tpu_custom_call.1
= control target key start
LH: loop header
LB: loop body
LE: loop exit
PB: predicated region body
PF: predicated region fallthrough
CT: control target
= control target key end

     0   :  { %8 = vsyncpa [#allocation4], 0  ;;  %s424_s0 = inlined_call_operand.hbm [shape: f32[16,128], index: 0, kind: input, shape index: {}]   ;;  %s425_s1 = inlined_call_operand.hbm [shape: f32[128,128], index: 1, kind: input, shape index: {}]   ;;  %s426_s2 = inlined_call_operand.vmem [shape: f32[1,128], index: 2, kind: input, shape index: {}]   ;;  %s427_s3 = inlined_call_operand.hbm [shape: f32[16,128], index: 3, kind: output, shape index: {}]  }
   0x1   :  { %9 = vsyncpa [#allocation7], 0 }
   0x2   :  { %10 = vsyncpa [#allocation5], 0  ;;  %s351_s12 = smov [#allocation3]   ;;  %s279_s16 = scalar_lea.hbm %s424_s0, 256 }
   0x3   :  { %s16_s13 = sshll.u32 %s351_s12, 4  ;;  %p280_p0 = scmp.ne.s32.totalorder %s424_s0, %s279_s16  ;;  %s17_s13 = int_to_ptr.vmem [resolvable:$true] %s16_s13 }
   0x4   :  { %p283_p1 = scmp.lt.u32.totalorder %s279_s16, %s424_s0 }
   0x6   :  { %p285_p2 = pnand %p283_p1, %p280_p0 }
   0x8   :  { %288 = shalt.err (!%p285_p2)
}
   0x9   :  { %s289_s21 = scalar_lea.vmem %s17_s13, 256  ;;  %p294_p4 = scmp.lt.s32.totalorder %s17_s13, %s17_s13 }
   0xa   :  { %p290_p3 = scmp.ne.s32.totalorder %s17_s13, %s289_s21  ;;  %p295_p5 = scmp.lt.s32.totalorder %s289_s21, %s289_s21 }
   0xc   :  { %p296_p6 = por %p295_p5, %p294_p4 }
   0xe   :  { %p297_p7 = pnand %p296_p6, %p290_p3 }
  0x10   :  { %300 = shalt.err (!%p297_p7)
}
  0x11   :  { %s352_s22 = smov 128   ;;  %s353_s23 = smov 8  }
  0x12   :  { %22 = dma.hbm_to_vmem [thread:$0]  %s424_s0, 256, %s17_s13, [#allocation4], %s352_s22, %s352_s22, %s353_s23  }
  0x13   :  { %s354_s26 = smov [#allocation6]   ;;  %s301_s30 = scalar_lea.hbm %s425_s1, 2048 }
  0x14   :  { %s28_s27 = sshll.u32 %s354_s26, 4  ;;  %p302_p8 = scmp.ne.s32.totalorder %s425_s1, %s301_s30  ;;  %s29_s27 = int_to_ptr.vmem [resolvable:$true] %s28_s27 }
  0x15   :  { %p305_p9 = scmp.lt.u32.totalorder %s301_s30, %s425_s1 }
  0x17   :  { %p307_p10 = pnand %p305_p9, %p302_p8 }
  0x19   :  { %310 = shalt.err (!%p307_p10)
}
  0x1a   :  { %s311_s8 = scalar_lea.vmem %s29_s27, 2048  ;;  %p316_p12 = scmp.lt.s32.totalorder %s29_s27, %s29_s27 }
  0x1b   :  { %p312_p11 = scmp.ne.s32.totalorder %s29_s27, %s311_s8  ;;  %p317_p13 = scmp.lt.s32.totalorder %s311_s8, %s311_s8 }
  0x1d   :  { %p318_p0 = por %p317_p13, %p316_p12 }
  0x1f   :  { %p319_p1 = pnand %p318_p0, %p312_p11 }
  0x21   :  { %322 = shalt.err (!%p319_p1)
}
  0x22   :  { %34 = dma.hbm_to_vmem [thread:$0]  %s425_s1, 2048, %s29_s27, [#allocation7], %s352_s22, %s352_s22, %s353_s23  }
  0x23   :  { %345 = dma.done.wait [#allocation4], 256  }
  0x24   :  { %346 = vsyncadd [#allocation4], 4294967040 }
  0x25   :  { %347 = dma.done.wait [#allocation7], 2048  }
  0x26   :  { %348 = vsyncadd [#allocation7], 4294965248  ;;  %v53_v0 = vld [vmem:[#allocation6] sm:$0xff]  ;;  %v54_v1 = vld [vmem:[#allocation6 + $0x8] sm:$0xff]  ;;  %s355_s11 = smov [#allocation8]  }
  0x27   :  { %v55_v2 = vld [vmem:[#allocation6 + $0x10] sm:$0xff]  ;;  %v238_v3 = vpack.c.bf16 %v54_v1, %v53_v0  ;;  %v56_v4 = vld [vmem:[#allocation6 + $0x18] sm:$0xff]  ;;  %v57_v6 = vld [vmem:[#allocation6 + $0x20] sm:$0xff]  ;;  %s171_s12 = sshll.u32 %s355_s11, 4  ;;  %s172_s12 = int_to_ptr.vmem [resolvable:$true] %s171_s12 }
  0x28   :  { %v242_v5 = vpack.c.bf16 %v56_v4, %v55_v2  ;;  %v58_v7 = vld [vmem:[#allocation6 + $0x28] sm:$0xff]  ;;  %v51_v9 = vld [vmem:[#allocation3] sm:$0xff]  ;;  %v60_v11 = vld [vmem:[#allocation6 + $0x38] sm:$0xff]  ;;  %s323_s13 = scalar_lea.vmem %s172_s12, 256  ;;  %p328_p3 = scmp.lt.s32.totalorder %s172_s12, %s172_s12 }
  0x29   :  { %239 = vmatprep.subr.bf16.mxu0 %v238_v3  ;;  %v246_v8 = vpack.c.bf16 %v58_v7, %v57_v6  ;;  %v59_v10 = vld [vmem:[#allocation6 + $0x30] sm:$0xff]  ;;  %235 = vmatprep.mubr.f32.mxu0 %v51_v9  ;;  %v61_v13 = vld [vmem:[#allocation6 + $0x40] sm:$0xff]  ;;  %v62_v14 = vld [vmem:[#allocation6 + $0x48] sm:$0xff]  ;;  %p324_p2 = scmp.ne.s32.totalorder %s172_s12, %s323_s13  ;;  %p329_p4 = scmp.lt.s32.totalorder %s323_s13, %s323_s13 }
  0x2a   :  { %241 = vmatpush3.bf16.msra.mxu0 %v238_v3  ;;  %v250_v12 = vpack.c.bf16 %v60_v11, %v59_v10  ;;  %v254_v15 = vpack.c.bf16 %v62_v14, %v61_v13  ;;  %v63_v16 = vld [vmem:[#allocation6 + $0x50] sm:$0xff]  ;;  %v64_v17 = vld [vmem:[#allocation6 + $0x58] sm:$0xff]  ;;  %v65_v19 = vld [vmem:[#allocation6 + $0x60] sm:$0xff] }
  0x2b   :  { %243 = vmatprep.subr.bf16.mxu0 %v242_v5  ;;  %v258_v18 = vpack.c.bf16 %v64_v17, %v63_v16  ;;  %v66_v20 = vld [vmem:[#allocation6 + $0x68] sm:$0xff]  ;;  %v67_v22 = vld [vmem:[#allocation6 + $0x70] sm:$0xff]  ;;  %v68_v23 = vld [vmem:[#allocation6 + $0x78] sm:$0xff]  ;;  %p330_p5 = por %p329_p4, %p328_p3 }
  0x2c   :  { %v262_v21 = vpack.c.bf16 %v66_v20, %v65_v19  ;;  %v266_v24 = vpack.c.bf16 %v68_v23, %v67_v22  ;;  %v52_v25 = vld [vmem:[#allocation3 + $0x8] sm:$0xff]  ;;  %v184_v26 = vld [vmem:[%s426_s2] ss:$0 sm:$0xff] }
  0x2d   :  { %p331_p6 = pnand %p330_p5, %p324_p2 }
  0x2e   :  { %245 = vmatpush3.bf16.msra.mxu0 %v242_v5 }
  0x2f   :  { %247 = vmatprep.subr.bf16.mxu0 %v246_v8 }
  0x32   :  { %249 = vmatpush3.bf16.msra.mxu0 %v246_v8 }
  0x33   :  { %251 = vmatprep.subr.bf16.mxu0 %v250_v12 }
  0x36   :  { %253 = vmatpush3.bf16.msra.mxu0 %v250_v12 }
  0x37   :  { %255 = vmatprep.subr.bf16.mxu0 %v254_v15 }
  0x3a   :  { %257 = vmatpush3.bf16.msra.mxu0 %v254_v15 }
  0x3b   :  { %259 = vmatprep.subr.bf16.mxu0 %v258_v18 }
  0x3e   :  { %261 = vmatpush3.bf16.msra.mxu0 %v258_v18 }
  0x3f   :  { %263 = vmatprep.subr.bf16.mxu0 %v262_v21 }
  0x42   :  { %265 = vmatpush3.bf16.msra.mxu0 %v262_v21 }
  0x43   :  { %267 = vmatprep.subr.bf16.mxu0 %v266_v24 }
  0x46   :  { %269 = vmatpush3.bf16.msra.mxu0 %v266_v24 }
  0x49   :  { %236 = vmatmul.mubr.f32.vlgmr.msra.gmra.mrb[0].mxu0 %v52_v25 }
 0x11c   :  { %v237_v27 = vpop.f32.mrb[0].mxu0 }
 0x11d   :  { %v161_v28 = vadd.f32 %v237_v27, %v184_v26  ;;  %v135_v29 = vpop.f32.mrb[1].mxu0 }
 0x11e   :  { %v160_v30 = vadd.f32 %v184_v26, %v135_v29 }
 0x11f   :  { %275 = vtanh.f32 %v161_v28 }
 0x120   :  { %277 = vtanh.f32 %v160_v30 }
 0x129   :  { %v276_v31 = vpop.eup %275 }
 0x12a   :  { %v278_v32 = vpop.eup %277  ;;  %165 = vst [vmem:[#allocation8 + $0x8] sm:$0xff] %v276_v31 }
 0x12b   :  { %164 = vst [vmem:[#allocation8] sm:$0xff] %v278_v32 }
 0x12c   :  { %334 = shalt.err (!%p331_p6)
}
 0x12d   :  { %s335_s15 = scalar_lea.hbm %s427_s3, 256 }
 0x12e   :  { %p336_p7 = scmp.ne.s32.totalorder %s427_s3, %s335_s15  ;;  %p339_p8 = scmp.lt.u32.totalorder %s335_s15, %s427_s3 }
 0x130   :  { %p341_p9 = pnand %p339_p8, %p336_p7 }
 0x132   :  { %344 = shalt.err (!%p341_p9)
}
 0x133   :  { %177 = dma.vmem_to_hbm [thread:$0]  %s172_s12, 256, %s427_s3, [#allocation5], %s352_s22, %s352_s22, %s353_s23  }
 0x134   :  { %349 = dma.done.wait [#allocation5], 256  }
 0x135   :  { %350 = vsyncadd [#allocation5], 4294967040 }
 0x136   :  { %181 = vsyncpa [#allocation4], 1 }
 0x137   :  { %182 = vsyncpa [#allocation7], 1 }
 0x138   :  { %183 = vsyncpa [#allocation5], 1 }

</bundles_post_ra>
